<compile_context>
chip_gen: v6e
topology: v6e:2x2x1
jax: 0.10.0
libtpu: 0.0.40
codegen_flags: <defaults>
</compile_context>

<pallas_src>
import functools

import jax
import jax.numpy as jnp
from jax.experimental import pallas as pl
from jax.experimental.pallas import tpu as pltpu

LANE = 128
VMEM_LIMIT = 64 * 1024 * 1024


# ----------------------------------------------------------------------------- helpers
def _rup(x, m):
    return (x + m - 1) // m * m


def _pad_last(a, n):
    pad = n - a.shape[-1]
    if pad == 0:
        return a
    widths = [(0, 0)] * (a.ndim - 1) + [(0, pad)]
    return jnp.pad(a, widths)


def _pick_tm(M):
    m128 = _rup(M, LANE)
    for tm in (512, 256, 128):
        if m128 % tm == 0 and m128 // tm >= 4:
            return tm
    return 128


def _erf(x):
    # Abramowitz & Stegun 7.1.26 erf approximation (~1.5e-7 abs err) -> exact-GELU semantics
    a1, a2, a3, a4, a5 = 0.254829592, -0.284496736, 1.421413741, -1.453152027, 1.061405429
    p = 0.3275911
    s = jnp.where(x >= 0.0, 1.0, -1.0)
    ax = jnp.abs(x)
    t = 1.0 / (1.0 + p * ax)
    y = 1.0 - ((((a5 * t + a4) * t + a3) * t + a2) * t + a1) * t * jnp.exp(-ax * ax)
    return s * y


def _apply_act(y, act):
    if act == "silu":
        return y * jax.nn.sigmoid(y)
    if act == "gelu":
        return 0.5 * y * (1.0 + _erf(y * 0.7071067811865476))
    if act == "relu":
        return jnp.maximum(y, 0.0)
    if act == "sigmoid":
        return jax.nn.sigmoid(y)
    return y


# ----------------------------------------------------------------------------- matmul (1x1 convs)
def _mm_kernel(*refs, k_offsets, act, has_res):
    # y = act((sum_i x_i @ w[k_i:k_{i+1}]) * scale + bias) [+ residual]
    n_in = len(k_offsets) - 1
    xs = refs[:n_in]
    w_ref, s_ref, b_ref = refs[n_in], refs[n_in + 1], refs[n_in + 2]
    res_ref = refs[n_in + 3] if has_res else None
    o_ref = refs[-1]

    acc = None
    for i in range(n_in):
        k0, k1 = k_offsets[i], k_offsets[i + 1]
        d = jnp.dot(xs[i][...], w_ref[k0:k1, :], preferred_element_type=jnp.float32)
        acc = d if acc is None else acc + d
    y = acc * s_ref[...] + b_ref[...]
    y = _apply_act(y, act)
    if has_res:
        y = y + res_ref[...].astype(jnp.float32)
    o_ref[...] = y.astype(o_ref.dtype)


def matmul_fused(xs, w, scale, bias, act="none", residual=None, out_dtype=jnp.bfloat16):
    # xs: list of (M, Ki); w: (sum Ki, N); scale/bias: (N,); residual: optional (M, N)
    M = xs[0].shape[0]
    N = w.shape[1]
    k_off = [0]
    for x in xs:
        k_off.append(k_off[-1] + x.shape[1])
    assert k_off[-1] == w.shape[0]
    K = k_off[-1]

    tm = _pick_tm(M)
    Mp = _rup(M, tm)

    def row_pad(a):
        a = a.astype(jnp.bfloat16)
        return jnp.pad(a, ((0, Mp - M), (0, 0))) if Mp != M else a

    xs = [row_pad(x) for x in xs]
    w = w.astype(jnp.bfloat16)
    scale = scale.reshape(1, N).astype(jnp.float32)
    bias = bias.reshape(1, N).astype(jnp.float32)

    in_specs = [pl.BlockSpec((tm, int(x.shape[1])), lambda i: (i, 0)) for x in xs]
    in_specs += [
        pl.BlockSpec((K, N), lambda i: (0, 0)),
        pl.BlockSpec((1, N), lambda i: (0, 0)),
        pl.BlockSpec((1, N), lambda i: (0, 0)),
    ]
    args = list(xs) + [w, scale, bias]
    if residual is not None:
        in_specs.append(pl.BlockSpec((tm, N), lambda i: (i, 0)))
        args.append(row_pad(residual))

    out = pl.pallas_call(
        functools.partial(_mm_kernel, k_offsets=tuple(k_off), act=act,
                          has_res=residual is not None),
        out_shape=jax.ShapeDtypeStruct((Mp, N), out_dtype),
        grid_spec=pltpu.PrefetchScalarGridSpec(
            num_scalar_prefetch=0,
            grid=(Mp // tm,),
            in_specs=in_specs,
            out_specs=pl.BlockSpec((tm, N), lambda i: (i, 0)),
        ),
        compiler_params=pltpu.CompilerParams(
            dimension_semantics=("parallel",), vmem_limit_bytes=VMEM_LIMIT),
    )(*args)
    return out[:M] if Mp != M else out


# ----------------------------------------------------------------------------- fused 3x3 conv
def _conv3x3_kernel(xp_ref, w_ref, s_ref, b_ref, o_ref, *, H, W, act):
    # dense 3x3 conv as 9 accumulated MXU dots on in-kernel shifted windows (no HBM im2col)
    cin = xp_ref.shape[-1]
    cout = w_ref.shape[1]
    acc = None
    for i in range(3):
        for j in range(3):
            win = xp_ref[:, i:i + H, j:j + W, :].reshape(H * W, cin)
            tap = i * 3 + j
            d = jnp.dot(win, w_ref[tap * cin:(tap + 1) * cin, :],
                        preferred_element_type=jnp.float32)
            acc = d if acc is None else acc + d
    y = acc * s_ref[...] + b_ref[...]
    y = _apply_act(y, act)
    o_ref[...] = y.reshape(1, H, W, cout).astype(o_ref.dtype)


def conv3x3_bn_act(x_sp, cblock, w9, scale, bias, act="silu"):
    # x_sp: (B, H, W, Ctot) NHWC; the kernel reads channel block `cblock` (width = w9 rows / 9)
    # TODO(synk): for production-scale H*W, tile over H with a 1-row halo (pl.Element) so the
    #             per-step block + accumulator fit v7x's 64 MiB VMEM and feed both TensorCores.
    B, H, W, _ = x_sp.shape
    cin = w9.shape[0] // 9
    cout = w9.shape[1]
    xp = jnp.pad(x_sp.astype(jnp.bfloat16), ((0, 0), (1, 1), (1, 1), (0, 0)))
    Hp, Wp = H + 2, W + 2
    return pl.pallas_call(
        functools.partial(_conv3x3_kernel, H=H, W=W, act=act),
        out_shape=jax.ShapeDtypeStruct((B, H, W, cout), jnp.bfloat16),
        grid_spec=pltpu.PrefetchScalarGridSpec(
            num_scalar_prefetch=0,
            grid=(B,),
            in_specs=[
                pl.BlockSpec((1, Hp, Wp, cin), lambda b, cb=cblock: (b, 0, 0, cb)),
                pl.BlockSpec((9 * cin, cout), lambda b: (0, 0)),
                pl.BlockSpec((1, cout), lambda b: (0, 0)),
                pl.BlockSpec((1, cout), lambda b: (0, 0)),
            ],
            out_specs=pl.BlockSpec((1, H, W, cout), lambda b: (b, 0, 0, 0)),
        ),
        compiler_params=pltpu.CompilerParams(
            dimension_semantics=("parallel",), vmem_limit_bytes=VMEM_LIMIT),
    )(xp, w9.astype(jnp.bfloat16),
      scale.reshape(1, cout).astype(jnp.float32),
      bias.reshape(1, cout).astype(jnp.float32))


# ----------------------------------------------------------------------------- depthwise convs
def _dw_kernel(*refs, kh, kw, H, W, act, has_mul):
    xp_ref, w_ref, b_ref, s_ref, t_ref = refs[:5]
    mul_ref = refs[5] if has_mul else None
    o_ref = refs[-1]
    C = w_ref.shape[1]
    acc = jnp.zeros((1, H, W, C), jnp.float32)
    # TODO(synk): the W-shifted taps could use pltpu.roll (XLU) instead of misaligned slices.
    for i in range(kh):
        for j in range(kw):
            tap = i * kw + j
            acc = acc + xp_ref[:, i:i + H, j:j + W, :].astype(jnp.float32) * w_ref[tap:tap + 1, :]
    y = (acc + b_ref[...]) * s_ref[...] + t_ref[...]
    y = _apply_act(y, act)
    if has_mul:
        y = y * mul_ref[...].astype(jnp.float32)
    o_ref[...] = y.astype(o_ref.dtype)


def depthwise_bn_act(x, w, bias, scale, shift, pad, act="none", mul=None):
    # x: (B,H,W,C) NHWC; w: (kh,kw,C) depthwise weights; optional fused elementwise `mul`
    B, H, W, C = x.shape
    kh, kw, _ = w.shape
    ph, pw = pad
    xp = jnp.pad(x.astype(jnp.bfloat16), ((0, 0), (ph, ph), (pw, pw), (0, 0)))
    Hp, Wp = H + 2 * ph, W + 2 * pw
    wf = w.reshape(kh * kw, C).astype(jnp.float32)
    args = [xp, wf,
            bias.reshape(1, C).astype(jnp.float32),
            scale.reshape(1, C).astype(jnp.float32),
            shift.reshape(1, C).astype(jnp.float32)]
    in_specs = [
        pl.BlockSpec((1, Hp, Wp, C), lambda b: (b, 0, 0, 0)),
        pl.BlockSpec((kh * kw, C), lambda b: (0, 0)),
        pl.BlockSpec((1, C), lambda b: (0, 0)),
        pl.BlockSpec((1, C), lambda b: (0, 0)),
        pl.BlockSpec((1, C), lambda b: (0, 0)),
    ]
    if mul is not None:
        args.append(mul.astype(jnp.bfloat16))
        in_specs.append(pl.BlockSpec((1, H, W, C), lambda b: (b, 0, 0, 0)))
    return pl.pallas_call(
        functools.partial(_dw_kernel, kh=kh, kw=kw, H=H, W=W, act=act, has_mul=mul is not None),
        out_shape=jax.ShapeDtypeStruct((B, H, W, C), jnp.bfloat16),
        grid_spec=pltpu.PrefetchScalarGridSpec(
            num_scalar_prefetch=0,
            grid=(B,),
            in_specs=in_specs,
            out_specs=pl.BlockSpec((1, H, W, C), lambda b: (b, 0, 0, 0)),
        ),
        compiler_params=pltpu.CompilerParams(
            dimension_semantics=("parallel",), vmem_limit_bytes=VMEM_LIMIT),
    )(*args)


# ----------------------------------------------------------------------------- H/W pool gather
def _pool_kernel(x_ref, o_ref):
    x = x_ref[...].astype(jnp.float32)
    H, W = x.shape[1], x.shape[2]
    mh = jnp.sum(x, axis=2, keepdims=True) * (1.0 / W)   # AdaptiveAvgPool2d((None,1))
    mw = jnp.sum(x, axis=1, keepdims=True) * (1.0 / H)   # AdaptiveAvgPool2d((1,None))
    o_ref[...] = (mh + mw).astype(o_ref.dtype)


def pool_gather(x):
    B, H, W, C = x.shape
    return pl.pallas_call(
        _pool_kernel,
        out_shape=jax.ShapeDtypeStruct((B, H, W, C), jnp.bfloat16),
        grid_spec=pltpu.PrefetchScalarGridSpec(
            num_scalar_prefetch=0,
            grid=(B,),
            in_specs=[pl.BlockSpec((1, H, W, C), lambda b: (b, 0, 0, 0))],
            out_specs=pl.BlockSpec((1, H, W, C), lambda b: (b, 0, 0, 0)),
        ),
        compiler_params=pltpu.CompilerParams(
            dimension_semantics=("parallel",), vmem_limit_bytes=VMEM_LIMIT),
    )(x.astype(jnp.bfloat16))


# ----------------------------------------------------------------------------- params
def bn_fold(g, b, m, v, eps=1e-5):
    s = g / jnp.sqrt(v + eps)
    return s, b - m * s


def init_params(c1, c2, n=1, key=jax.random.PRNGKey(0)):
    c = int(c2 * 0.5)
    keys = iter(jax.random.split(key, 64))

    def nrm(shape, scl=0.2):
        return scl * jax.random.normal(next(keys), shape, jnp.float32)

    def bn(ch):
        g = 1.0 + 0.1 * jax.random.normal(next(keys), (ch,), jnp.float32)
        b = 0.1 * jax.random.normal(next(keys), (ch,), jnp.float32)
        m = 0.1 * jax.random.normal(next(keys), (ch,), jnp.float32)
        v = 1.0 + 0.1 * jnp.abs(jax.random.normal(next(keys), (ch,), jnp.float32))
        return bn_fold(g, b, m, v)

    p = {"c": c}
    p["cv1_w"], p["cv1_bn"] = nrm((c1, 2 * c)), bn(2 * c)
    p["m"] = []
    for _ in range(n):
        p["m"].append({
            "cv1_w": nrm((3, 3, c, c)), "cv1_bn": bn(c),
            "cv2_w": nrm((3, 3, c, c)), "cv2_bn": bn(c),
        })
    p["cv2_w"], p["cv2_bn"] = nrm(((2 + n) * c, c2)), bn(c2)
    # RCM / RCA (dim=c2, band_kernel_size=11, square_kernel_size=3, ratio=1)
    p["dwhw_w"], p["dwhw_b"] = nrm((3, 3, c2)), nrm((c2,), 0.1)
    p["ex1_w"], p["ex1_b"], p["ex1_bn"] = nrm((1, 11, c2)), nrm((c2,), 0.1), bn(c2)
    p["ex2_w"], p["ex2_b"] = nrm((11, 1, c2)), nrm((c2,), 0.1)
    p["norm_bn"] = bn(c2)
    hid = 2 * c2
    p["fc1_w"], p["fc1_b"] = nrm((c2, hid)), nrm((hid,), 0.1)
    p["fc2_w"], p["fc2_b"] = nrm((hid, c2)), nrm((c2,), 0.1)
    p["gamma"] = 1e-6 * jnp.ones((c2,), jnp.float32)
    return p


# ----------------------------------------------------------------------------- forward
def c2f_rcm_forward(x_nchw, p, c1, c2, n=1):
    B, _, H, W = x_nchw.shape
    c = p["c"]
    Cp, C1p, C2p = _rup(c, LANE), _rup(c1, LANE), _rup(c2, LANE)
    hid = p["fc1_w"].shape[1]
    HIDp = _rup(hid, LANE)
    M = B * H * W

    x = jnp.transpose(x_nchw, (0, 2, 3, 1)).astype(jnp.float32)     # NHWC
    xf = _pad_last(x, C1p).reshape(M, C1p)

    # ---- cv1: 1x1 Conv + BN + SiLU; the two chunks live at channel offsets 0 and Cp
    s, t = p["cv1_bn"]
    w1 = jnp.zeros((C1p, 2 * Cp), jnp.float32)
    w1 = w1.at[:c1, :c].set(p["cv1_w"][:, :c]).at[:c1, Cp:Cp + c].set(p["cv1_w"][:, c:])
    s1 = jnp.zeros((2 * Cp,), jnp.float32).at[:c].set(s[:c]).at[Cp:Cp + c].set(s[c:])
    t1 = jnp.zeros((2 * Cp,), jnp.float32).at[:c].set(t[:c]).at[Cp:Cp + c].set(t[c:])
    y = matmul_fused([xf], w1, s1, t1, act="silu")                  # (M, 2*Cp)
    y_sp = y.reshape(B, H, W, 2 * Cp)

    # ---- Bottlenecks (shortcut=False): two fused 3x3 Conv+BN+SiLU each, no HBM im2col
    def pad3x3(w):
        cin, cout = w.shape[2], w.shape[3]
        return (jnp.zeros((3, 3, Cp, Cp), jnp.float32)
                .at[:, :, :cin, :cout].set(w).reshape(9 * Cp, Cp))

    pieces = []
    cur_sp, cur_blk = y_sp, 1          # second cv1 chunk is read via channel-offset BlockSpec
    for blk in p["m"]:
        s1b, t1b = blk["cv1_bn"]
        h_sp = conv3x3_bn_act(cur_sp, cur_blk, pad3x3(blk["cv1_w"]),
                              _pad_last(s1b, Cp), _pad_last(t1b, Cp), act="silu")
        s2b, t2b = blk["cv2_bn"]
        o_sp = conv3x3_bn_act(h_sp, 0, pad3x3(blk["cv2_w"]),
                              _pad_last(s2b, Cp), _pad_last(t2b, Cp), act="silu")
        pieces.append(o_sp.reshape(M, Cp))
        cur_sp, cur_blk = o_sp, 0

    # ---- cv2 on the implicit concat: sum of per-piece MXU dots in one kernel (no concat copy)
    s2, t2 = p["cv2_bn"]
    w2 = jnp.zeros(((2 + n) * Cp, C2p), jnp.float32)
    for k in range(2 + n):
        w2 = w2.at[k * Cp:k * Cp + c, :c2].set(p["cv2_w"][k * c:(k + 1) * c, :])
    tfeat = matmul_fused([y] + pieces, w2, _pad_last(s2, C2p), _pad_last(t2, C2p), act="silu")
    t_img = tfeat.reshape(B, H, W, C2p)

    # ---- RCM token mixer (RCA)
    ones = jnp.ones((C2p,), jnp.float32)
    zeros = jnp.zeros((C2p,), jnp.float32)
    # dwconv_hw: depthwise 3x3 + bias
    loc = depthwise_bn_act(t_img, _pad_last(p["dwhw_w"], C2p), _pad_last(p["dwhw_b"], C2p),
                           ones, zeros, (1, 1), act="none")
    # sge: pool_h + pool_w, excite = dw(1,11)+BN+ReLU -> dw(11,1)+Sigmoid; att*loc fused in epilogue
    g = pool_gather(t_img)
    se1, te1 = p["ex1_bn"]
    e = depthwise_bn_act(g, _pad_last(p["ex1_w"], C2p), _pad_last(p["ex1_b"], C2p),
                         _pad_last(se1, C2p), _pad_last(te1, C2p), (0, 5), act="relu")
    rca_sp = depthwise_bn_act(e, _pad_last(p["ex2_w"], C2p), _pad_last(p["ex2_b"], C2p),
                              ones, zeros, (5, 0), act="sigmoid", mul=loc)
    rca = rca_sp.reshape(M, C2p)

    # ---- RCM.norm (BN) folded into mlp.fc1; gamma folded into fc2; residual fused in fc2 epilogue
    sn, tn = p["norm_bn"]
    snp, tnp = _pad_last(sn, C2p), _pad_last(tn, C2p)
    fc1w = jnp.zeros((C2p, HIDp), jnp.float32).at[:c2, :hid].set(p["fc1_w"])
    fc1b = _pad_last(p["fc1_b"], HIDp)
    w_fc1 = snp[:, None] * fc1w
    b_fc1 = tnp @ fc1w + fc1b
    h = matmul_fused([rca], w_fc1, jnp.ones((HIDp,), jnp.float32), b_fc1, act="gelu")

    gm = _pad_last(p["gamma"], C2p)
    fc2w = jnp.zeros((HIDp, C2p), jnp.float32).at[:hid, :c2].set(p["fc2_w"])
    fc2b = _pad_last(p["fc2_b"], C2p)
    out = matmul_fused([h], fc2w * gm[None, :], ones, fc2b * gm, act="none",
                       residual=tfeat, out_dtype=jnp.float32)       # drop_path(0.0) = Identity

    out = out.reshape(B, H, W, C2p)[:, :, :, :c2]
    return jnp.transpose(out, (0, 3, 1, 2))                         # back to NCHW


if __name__ == "__main__":
    c1, c2, n = 4, 8, 1
    B, H, W = 2, 16, 16
    key = jax.random.PRNGKey(0)
    k_x, k_p = jax.random.split(key)
    x = jax.random.normal(k_x, (B, c1, H, W), jnp.float32)          # NCHW, as PyTorch
    params = init_params(c1, c2, n=n, key=k_p)
    out = c2f_rcm_forward(x, params, c1, c2, n=n)
    jax.block_until_ready(out)
    assert out.shape == (B, c2, H, W)
    print("KERNEL_OK")
</pallas_src>

<mosaic_0001>
module attributes {stable_mosaic.version = 11 : i64} {
  func.func @_mm_kernel(%arg0: i32, %arg1: memref<128x128xbf16, #tpu.memory_space<vmem>>, %arg2: memref<128x256xbf16, #tpu.memory_space<vmem>>, %arg3: memref<1x256xf32, #tpu.memory_space<vmem>>, %arg4: memref<1x256xf32, #tpu.memory_space<vmem>>, %arg5: memref<128x256xbf16, #tpu.memory_space<vmem>>) attributes {dimension_semantics = [#tpu.dimension_semantics<parallel>], iteration_bounds = array<i64: 4>, scalar_prefetch = 0 : i64, scratch_operands = 0 : i64, tpu.core_type = #tpu.core_type<tc>, window_params = [{transform_indices = @transform_0, window_bounds = array<i64: 128, 128>}, {pipeline_mode = #tpu.pipeline_mode<synchronous>, transform_indices = @transform_1, window_bounds = array<i64: 128, 256>}, {pipeline_mode = #tpu.pipeline_mode<synchronous>, transform_indices = @transform_2, window_bounds = array<i64: 1, 256>}, {pipeline_mode = #tpu.pipeline_mode<synchronous>, transform_indices = @transform_3, window_bounds = array<i64: 1, 256>}, {transform_indices = @transform_4, window_bounds = array<i64: 128, 256>}]} {
    %c0 = arith.constant 0 : index
    %c0_0 = arith.constant 0 : index
    %0 = vector.load %arg1[%c0, %c0_0] : memref<128x128xbf16, #tpu.memory_space<vmem>>, vector<128x128xbf16>
    %c0_1 = arith.constant 0 : index
    %c0_2 = arith.constant 0 : index
    %1 = vector.load %arg2[%c0_1, %c0_2] : memref<128x256xbf16, #tpu.memory_space<vmem>>, vector<128x256xbf16>
    %cst = arith.constant dense<0.000000e+00> : vector<128x256xf32>
    %2 = tpu.matmul %0, %1, %cst {dimension_numbers = #tpu.dot_dimension_numbers<[1], [0], [0], [1], [0, 0, 1, 1], [], []>} : vector<128x128xbf16>, vector<128x256xbf16>, vector<128x256xf32> -> vector<128x256xf32>
    %c0_3 = arith.constant 0 : index
    %c0_4 = arith.constant 0 : index
    %3 = vector.load %arg3[%c0_3, %c0_4] : memref<1x256xf32, #tpu.memory_space<vmem>>, vector<1x256xf32>
    %4 = vector.broadcast %3 : vector<1x256xf32> to vector<128x256xf32>
    %5 = arith.mulf %2, %4 : vector<128x256xf32>
    %c0_5 = arith.constant 0 : index
    %c0_6 = arith.constant 0 : index
    %6 = vector.load %arg4[%c0_5, %c0_6] : memref<1x256xf32, #tpu.memory_space<vmem>>, vector<1x256xf32>
    %7 = vector.broadcast %6 : vector<1x256xf32> to vector<128x256xf32>
    %8 = arith.addf %5, %7 : vector<128x256xf32>
    %9 = arith.negf %8 : vector<128x256xf32>
    %10 = math.exp %9 : vector<128x256xf32>
    %cst_7 = arith.constant 1.000000e+00 : f32
    %11 = vector.broadcast %cst_7 : f32 to vector<128x256xf32>
    %12 = arith.addf %11, %10 : vector<128x256xf32>
    %13 = arith.divf %11, %12 : vector<128x256xf32>
    %14 = arith.mulf %8, %13 : vector<128x256xf32>
    %15 = arith.truncf %14 : vector<128x256xf32> to vector<128x256xbf16>
    %c0_8 = arith.constant 0 : index
    %c0_9 = arith.constant 0 : index
    %16 = vector.load %arg5[%c0_8, %c0_9] : memref<128x256xbf16, #tpu.memory_space<vmem>>, vector<128x256xbf16>
    tpu.vector_store %arg5[%c0_8, %c0_9], %15 {strides = array<i32>} : memref<128x256xbf16, #tpu.memory_space<vmem>>, vector<128x256xbf16>,
    return
  }
  func.func @transform_0(%arg0: i32) -> (i32, i32) {
    %c0_i32 = arith.constant 0 : i32
    %c0_i32_0 = arith.constant 0 : i32
    return %arg0, %c0_i32 : i32, i32
  }
  func.func @transform_1(%arg0: i32) -> (i32, i32) {
    %c0_i32 = arith.constant 0 : i32
    %c0_i32_0 = arith.constant 0 : i32
    %c0_i32_1 = arith.constant 0 : i32
    return %c0_i32, %c0_i32_0 : i32, i32
  }
  func.func @transform_2(%arg0: i32) -> (i32, i32) {
    %c0_i32 = arith.constant 0 : i32
    %c0_i32_0 = arith.constant 0 : i32
    %c0_i32_1 = arith.constant 0 : i32
    return %c0_i32, %c0_i32_0 : i32, i32
  }
  func.func @transform_3(%arg0: i32) -> (i32, i32) {
    %c0_i32 = arith.constant 0 : i32
    %c0_i32_0 = arith.constant 0 : i32
    %c0_i32_1 = arith.constant 0 : i32
    return %c0_i32, %c0_i32_0 : i32, i32
  }
  func.func @transform_4(%arg0: i32) -> (i32, i32) {
    %c0_i32 = arith.constant 0 : i32
    %c0_i32_0 = arith.constant 0 : i32
    return %arg0, %c0_i32 : i32, i32
  }
}

</mosaic_0001>

<bundles_post_ra>
// kernel: tpu_custom_call.1
= control target key start
LH: loop header
LB: loop body
LE: loop exit
PB: predicated region body
PF: predicated region fallthrough
CT: control target
= control target key end

     0   :  { %9 = vsyncpa [#allocation3], 0  ;;  %s1957_s0 = inlined_call_operand.hbm [shape: bf16[512,128], index: 0, kind: input, shape index: {}]   ;;  %s1958_s1 = inlined_call_operand.hbm [shape: bf16[128,256], index: 1, kind: input, shape index: {}]   ;;  %s1959_s2 = inlined_call_operand.vmem [shape: f32[1,256], index: 2, kind: input, shape index: {}]   ;;  %s1960_s3 = inlined_call_operand.vmem [shape: f32[1,256], index: 3, kind: input, shape index: {}]   ;;  %s1961_s4 = inlined_call_operand.hbm [shape: bf16[512,256], index: 4, kind: output, shape index: {}]  }
   0x1   :  { %11 = vsyncpa [#allocation3 + $0x1], 0 }
   0x2   :  { %12 = vsyncpa [#allocation6], 0 }
   0x3   :  { %13 = vsyncpa [#allocation4], 0 }
   0x4   :  { %15 = vsyncpa [#allocation4 + $0x1], 0  ;;  %s1536_s15 = smov 0   ;;  %s1538_s16 = smov 0  }
   0x5   :  { %s1540_s17 = smov 0   ;;  %s1542_s18 = smov 0  }
   0x6 LB: > { %s1557_s19 = sadd.s32 4294967295, %s1499_s18   ;;  %s1029_s20 = sadd.s32 4294967294, %s1499_s18   ;;  %s1499_s18 = sphi %s1542_s18, %s1982_s18   ;;  %s1495_s17 = sphi %s1540_s17, %s1981_s17   ;;  %s1491_s16 = sphi %s1538_s16, %s1980_s16   ;;  %s1487_s15 = sphi %s1536_s15, %s1979_s15  }
   0x7   : > { %p41_p0 = scmp.ne.s32.totalorder %s1491_s16, %s1487_s15  ;;  %p1962_p1 = scmp.eq.s32.totalorder %s1557_s19, 0 }
   0x8   : > { %p134_p3 = scmp.eq.s32.totalorder %s1029_s20, 3  ;;  %p1030_p5 = scmp.ge.s32.totalorder %s1499_s18, 1 }
   0x9   : > { %p1566_p4 = por %p1962_p1, %p41_p0  ;;  %p141_p7 = scmp.lt.s32.totalorder %s1499_s18, 5 }
   0xa   : > { %p1571_p6 = por %p134_p3, %p41_p0  ;;  %s1501_s24 = smov [#allocation5]  }
   0xb   : > { %s1966_s21 = scalar_select %p1566_p4, 1, 0 }
   0xc   : > { %s1967_s22 = scalar_select %p1571_p6, 1, 0 }
   0xd   : > { %p1576_p8 = pnand %p1030_p5, %p141_p7  ;;  %s153_s25 = sshll.u32 %s1501_s24, 4  ;;  %s154_s25 = int_to_ptr.vmem [resolvable:$true] %s153_s25 }
   0xe   : > { %s1589_s27 = sadd.s32 1, %s1499_s18   ;;  %s28_s28 = sadd.s32 1, %s1495_s17 }
   0xf   : > { %s1968_s23 = scalar_select %p1576_p8, 1, 0 }
  0x10   : > { %p1161_p9 = pneg %p1576_p8  ;;  %s25_s29 = ssub.s32 %s1499_s18, %s1589_s27 }
  0x11   : > { %s1388_s30 = scalar_lea.vmem %s154_s25, 2048  ;;  %p1396_p3 = scmp.lt.s32.totalorder %s154_s25, %s154_s25 }
  0x12   : > { %p1584_p10 = pnand %p1161_p9, %p1962_p1  ;;  %p1389_p12 = scmp.ne.s32.totalorder %s154_s25, %s1388_s30 }
  0x13   : > { %p1397_p5 = scmp.lt.s32.totalorder %s1388_s30, %s1388_s30 }
  0x14   : > { %p1379_p11 = pneg %p1584_p10 }
  0x15   : > { %p1398_p7 = por %p1397_p5, %p1396_p3 }
  0x16   : > { %p1391_p13 = pnand %p1389_p12, %p1379_p11 }
  0x18   : > { %p1392_p0 = pneg %p1391_p13 }
  0x1a   : > { %p1399_p2 = pnand %p1398_p7, %p1392_p0 }
  0x1c   : > { %1402 = shalt.err (!%p1399_p2)
}
  0x1d   : > { %s1502_s5 = smov 128   ;;  %s1503_s6 = smov 8  }
  0x1e   : > { %1164 = dma.hbm_to_vmem [thread:$0]  (!%p1584_p10), %s1958_s1, 2048, %s154_s25, [#allocation6], %s1502_s5, %s1502_s5, %s1503_s6  }
  0x1f   : > { %p26_p9 = scmp.eq.s32.totalorder %s25_s29, 0  ;;  %p35_p11 = scmp.ne.s32.totalorder %s1495_s17, %s1491_s16 }
  0x20   : > { %p36_p12 = scmp.eq.s32.totalorder %s1499_s18, 0  ;;  %p1174_p2 = scmp.lt.s32.totalorder %s1499_s18, 4 }
  0x21   : > { %s1606_s9 = scalar_select %p26_p9, %s1495_s17, %s28_s28  }
  0x22   : > { %p37_p13 = por %p36_p12, %p35_p11  ;;  %p1970_p0 = scmp.eq.s32.totalorder %s1557_s19, 3 }
  0x23   : > { %s173_s11 = sand.u32 1, %s1495_s17   ;;  %s1118_s12 = sshll.u32 %s1499_s18, 10 }
  0x24   : > { %p1610_p3 = por %p1970_p0, %p35_p11  ;;  %s1033_s13 = sshll.u32 %s173_s11, 6 }
  0x25   : > { %s1619_s24 = scalar_lea.hbm %s1957_s0, %s1118_s12  ;;  %s177_s25 = scalar_lea.vmem [#allocation2], %s1033_s13 }
  0x26   : > { %s1971_s10 = scalar_select %p1610_p3, 1, 0 }
  0x27   : > { %s184_s26 = sshll.u32 %s177_s25, 4  ;;  %p1621_p10 = pnand %p1174_p2, %p37_p13  ;;  %s1625_s26 = int_to_ptr.vmem [resolvable:$true] %s184_s26 }
  0x28   : > { %s1627_s29 = scalar_lea.sflag [#allocation3], %s173_s11  ;;  %s1403_s30 = scalar_lea.hbm %s1619_s24, 1024 }
  0x29   : > { %p1404_p5 = scmp.ne.s32.totalorder %s1619_s24, %s1403_s30  ;;  %p1405_p7 = pneg %p1621_p10 }
  0x2a   : > { %s1408_s7 = scalar_lea.hbm %s1957_s0, 4096  ;;  %p1409_p12 = scmp.lt.s32.totalorder %s1619_s24, %s1957_s0 }
  0x2b   : > { %p1406_p9 = pnand %p1405_p7, %p1404_p5  ;;  %p1410_p2 = scmp.lt.s32.totalorder %s1408_s7, %s1403_s30 }
  0x2d   : > { %p1407_p11 = pneg %p1406_p9  ;;  %p1411_p13 = por %p1410_p2, %p1409_p12 }
  0x2f   : > { %p1412_p0 = pnand %p1411_p13, %p1407_p11 }
  0x31   : > { %1415 = shalt.err (!%p1412_p0)
}
  0x32   : > { %s1416_s11 = scalar_lea.vmem %s1625_s26, 1024  ;;  %s1504_s13 = smov [#allocation2]  }
  0x33   : > { %p1417_p1 = scmp.ne.s32.totalorder %s1625_s26, %s1416_s11  ;;  %s1421_s14 = sshll.u32 %s1504_s13, 4  ;;  %s1422_s14 = int_to_ptr.vmem [resolvable:$false] %s1421_s14 }
  0x34   : > { %s1423_s20 = scalar_lea.vmem %s1422_s14, 2048  ;;  %p1424_p9 = scmp.lt.s32.totalorder %s1625_s26, %s1422_s14 }
  0x35   : > { %p1419_p6 = pnand %p1417_p1, %p1405_p7  ;;  %p1425_p3 = scmp.lt.s32.totalorder %s1423_s20, %s1416_s11 }
  0x37   : > { %p1420_p5 = pneg %p1419_p6  ;;  %p1426_p4 = por %p1425_p3, %p1424_p9 }
  0x39   : > { %p1427_p8 = pnand %p1426_p4, %p1420_p5 }
  0x3b   : > { %1430 = shalt.err (!%p1427_p8)
}
  0x3c   : > { %s1505_s25 = smov 64   ;;  %s1506_s30 = smov 4  }
  0x3d   : > { %1168 = dma.hbm_to_vmem [thread:$0]  (!%p1621_p10), %s1619_s24, 1024, %s1625_s26, %s1627_s29, %s1505_s25, %s1505_s25, %s1506_s30  }
  0x3e   : > { %p1973_p1 = scmp.ne.s32.totalorder %s1968_s23, 0 }
  0x3f   : > { %s1651_s5 = sand.u32 (!%p1973_p1), 1, %s1491_s16   ;;  %p1974_p4 = scmp.ne.s32.totalorder (!%p1973_p1), %s1966_s21, 0 }
  0x40   : > { %196 = sbr.rel (%p1973_p1) target bundleno = 406 (0x196), region = 36  ;;  %s1037_s6 = sshll.u32 (!%p1973_p1), %s1651_s5, 6 }
  0x41   : > { %s199_s7 = scalar_lea.sflag (!%p1973_p1), [#allocation3], %s1651_s5  ;;  %s1655_s8 = scalar_lea.vmem (!%p1973_p1), [#allocation2], %s1037_s6 }
  0x45   : > { %1474 = dma.done.wait (%p1974_p4), %s199_s7, 1024  }
  0x46   : > { %1476 = vsyncadd (%p1974_p4), %s199_s7, 4294966272  ;;  %p1975_p6 = scmp.eq.s32.totalorder %s1557_s19, 0 }
  0x48   : > { %1478 = dma.done.wait (%p1975_p6), [#allocation6], 2048   ;;  %p1976_p8 = pmov %p1975_p6 }
  0x49   : > { %v1507_v0 = vmov 0   ;;  %v1217_v1 = vld [vmem:[#allocation5 + $0x74] ss:$8 sps:$4 sm:$0xff]   ;;  %v1219_v2 = vld [vmem:[#allocation5 + $0x70] ss:$8 sps:$4 sm:$0xff]   ;;  %v1241_v17 = vld [vmem:[%s1655_s8] sm:$0xff]   ;;  %v509_v25 = vlaneseq }
  0x4a   : > { %1480 = vsyncadd (%p1976_p8), [#allocation6], 4294965248  ;;  %426 = vmatprep.mubr.bf16.mxu0 %v1507_v0  ;;  %466 = vmatprep.mubr.bf16.mxu1 %v1507_v0  ;;  %v1220_v3 = vld [vmem:[#allocation5 + $0x64] ss:$8 sps:$4 sm:$0xff]   ;;  %v1222_v4 = vld [vmem:[#allocation5 + $0x60] ss:$8 sps:$4 sm:$0xff]  }
  0x4b   : > { %394 = vmatprep.subr.bf16.mxu0 %v1217_v1  ;;  %1137 = vmatprep.subr.bf16.mxu1 %v1217_v1  ;;  %v1223_v5 = vld [vmem:[#allocation5 + $0x54] ss:$8 sps:$4 sm:$0xff]   ;;  %v1225_v6 = vld [vmem:[#allocation5 + $0x50] ss:$8 sps:$4 sm:$0xff]   ;;  %v1226_v7 = vld [vmem:[#allocation5 + $0x44] ss:$8 sps:$4 sm:$0xff]  }
  0x4c   : > { %395 = vmatpush1.bf16.msra.mxu0 %v1219_v2  ;;  %1145 = vmatpush1.bf16.msra.mxu1 %v1219_v2  ;;  %v1228_v8 = vld [vmem:[#allocation5 + $0x40] ss:$8 sps:$4 sm:$0xff]   ;;  %v1229_v9 = vld [vmem:[#allocation5 + $0x34] ss:$8 sps:$4 sm:$0xff]   ;;  %v1231_v10 = vld [vmem:[#allocation5 + $0x30] ss:$8 sps:$4 sm:$0xff]  }
  0x4d   : > { %396 = vmatprep.subr.bf16.mxu0 %v1220_v3  ;;  %1138 = vmatprep.subr.bf16.mxu1 %v1220_v3  ;;  %v1232_v11 = vld [vmem:[#allocation5 + $0x24] ss:$8 sps:$4 sm:$0xff]   ;;  %v1234_v12 = vld [vmem:[#allocation5 + $0x20] ss:$8 sps:$4 sm:$0xff]   ;;  %v1235_v13 = vld [vmem:[#allocation5 + $0x14] ss:$8 sps:$4 sm:$0xff]  }
  0x4e   : > { %v1237_v14 = vld [vmem:[#allocation5 + $0x10] ss:$8 sps:$4 sm:$0xff]   ;;  %v1238_v15 = vld [vmem:[#allocation5 + $0x4] ss:$8 sps:$4 sm:$0xff]   ;;  %v1240_v16 = vld [vmem:[#allocation5] ss:$8 sps:$4 sm:$0xff]  }
  0x4f   : > { %v1242_v18 = vld [vmem:[%s1655_s8 + $0x20] sm:$0xff]   ;;  %v1243_v19 = vld [vmem:[%s1655_s8 + $0x8] sm:$0xff]   ;;  %v1245_v21 = vld [vmem:[%s1655_s8 + $0x10] sm:$0xff]   ;;  %v510_v26 = vshrl.u32 %v509_v25, 7  ;;  %s1039_s28 = sshll.u32 %s1651_s5, 7  ;;  %s1136_s12 = sshll.u32 %s1557_s19, 11 }
  0x50   : > { %397 = vmatpush1.bf16.msra.mxu0 %v1222_v4  ;;  %1146 = vmatpush1.bf16.msra.mxu1 %v1222_v4  ;;  %v1244_v20 = vld [vmem:[%s1655_s8 + $0x28] sm:$0xff]   ;;  %v1246_v22 = vld [vmem:[%s1655_s8 + $0x30] sm:$0xff]   ;;  %v1247_v23 = vld [vmem:[%s1655_s8 + $0x18] sm:$0xff]   ;;  %s1838_s29 = scalar_lea.vmem [#allocation7], %s1039_s28  ;;  %s1912_s20 = scalar_lea.hbm %s1961_s4, %s1136_s12 }
  0x51   : > { %398 = vmatprep.subr.bf16.mxu0 %v1223_v5  ;;  %1139 = vmatprep.subr.bf16.mxu1 %v1223_v5  ;;  %v1248_v24 = vld [vmem:[%s1655_s8 + $0x38] sm:$0xff]   ;;  %v511_v27 = vsub.s32 0, %v510_v26  ;;  %v507_v28 = vld [vmem:[%s1959_s2] sm:$0x3]  ;;  %v515_v29 = vsub.s32 1, %v510_v26  ;;  %s946_s11 = sshll.u32 %s1838_s29, 4  ;;  %s1914_s11 = int_to_ptr.vmem [resolvable:$true] %s946_s11 }
  0x52   : > { %v551_v30 = vld [vmem:[%s1960_s3] sm:$0x3]  ;;  %s932_s19 = scalar_lea.sflag [#allocation4], %s1651_s5  ;;  %s1431_s25 = scalar_lea.vmem %s1914_s11, 2048 }
  0x53   : > { %v1687_v31 = vrot.slane %v507_v28, %v511_v27  ;;  %v1689_v32 = vrot.slane %v551_v30, %v511_v27  ;;  %v1691_v33 = vrot.slane %v507_v28, %v515_v29  ;;  %v1695_v38 = vrot.slane %v551_v30, %v515_v29  ;;  %p1432_p3 = scmp.ne.s32.totalorder %s1914_s11, %s1431_s25  ;;  %p1977_p10 = scmp.ne.s32.totalorder %s1971_s10, 0 }
  0x54   : > { %399 = vmatpush1.bf16.msra.mxu0 %v1225_v6  ;;  %1147 = vmatpush1.bf16.msra.mxu1 %v1225_v6  ;;  %s1508_s30 = smov [#allocation7]  }
  0x55   : > { %400 = vmatprep.subr.bf16.mxu0 %v1226_v7  ;;  %1140 = vmatprep.subr.bf16.mxu1 %v1226_v7  ;;  %p1433_p7 = pnand %p1432_p3, %p1977_p10  ;;  %s1435_s6 = sshll.u32 %s1508_s30, 4  ;;  %s1436_s6 = int_to_ptr.vmem [resolvable:$false] %s1435_s6 }
  0x56   : > { %s1437_s7 = scalar_lea.vmem %s1436_s6, 4096  ;;  %p1438_p12 = scmp.lt.s32.totalorder %s1914_s11, %s1436_s6 }
  0x57   : > { %p1434_p11 = pneg %p1433_p7  ;;  %p1439_p2 = scmp.lt.s32.totalorder %s1437_s7, %s1431_s25 }
  0x58   : > { %401 = vmatpush1.bf16.msra.mxu0 %v1228_v8  ;;  %1148 = vmatpush1.bf16.msra.mxu1 %v1228_v8 }
  0x59   : > { %402 = vmatprep.subr.bf16.mxu0 %v1229_v9  ;;  %1141 = vmatprep.subr.bf16.mxu1 %v1229_v9  ;;  %p1440_p13 = por %p1439_p2, %p1438_p12 }
  0x5b   : > { %p1441_p0 = pnand %p1440_p13, %p1434_p11 }
  0x5c   : > { %403 = vmatpush1.bf16.msra.mxu0 %v1231_v10  ;;  %1149 = vmatpush1.bf16.msra.mxu1 %v1231_v10 }
  0x5d   : > { %404 = vmatprep.subr.bf16.mxu0 %v1232_v11  ;;  %1142 = vmatprep.subr.bf16.mxu1 %v1232_v11 }
  0x60   : > { %405 = vmatpush1.bf16.msra.mxu0 %v1234_v12  ;;  %1150 = vmatpush1.bf16.msra.mxu1 %v1234_v12 }
  0x61   : > { %406 = vmatprep.subr.bf16.mxu0 %v1235_v13  ;;  %1143 = vmatprep.subr.bf16.mxu1 %v1235_v13 }
  0x64   : > { %407 = vmatpush1.bf16.msra.mxu0 %v1237_v14  ;;  %1151 = vmatpush1.bf16.msra.mxu1 %v1237_v14 }
  0x65   : > { %408 = vmatprep.subr.bf16.mxu0 %v1238_v15  ;;  %1144 = vmatprep.subr.bf16.mxu1 %v1238_v15 }
  0x68   : > { %409 = vmatpush1.bf16.msra.mxu0 %v1240_v16  ;;  %1152 = vmatpush1.bf16.msra.mxu1 %v1240_v16 }
  0x6b   : > { %427 = vmatmul.mubr.bf16.vlgmr.msra.gmra.mxu0 %v1241_v17  ;;  %467 = vmatmul.mubr.bf16.vlgmr.msra.gmra.mxu1 %v1242_v18 }
  0x6c   : > { %436 = vmatprep.mubr.bf16.mxu0 %v1507_v0  ;;  %476 = vmatprep.mubr.bf16.mxu1 %v1507_v0 }
  0x73   : > { %437 = vmatmul.mubr.bf16.gmra.mxu0 %v1243_v19  ;;  %477 = vmatmul.mubr.bf16.gmra.mxu1 %v1244_v20 }
  0x74   : > { %446 = vmatprep.mubr.bf16.mxu0 %v1507_v0  ;;  %486 = vmatprep.mubr.bf16.mxu1 %v1507_v0 }
  0x7b   : > { %447 = vmatmul.mubr.bf16.gmra.mxu0 %v1245_v21  ;;  %487 = vmatmul.mubr.bf16.gmra.mxu1 %v1246_v22 }
  0x7c   : > { %456 = vmatprep.mubr.bf16.mxu0 %v1507_v0  ;;  %496 = vmatprep.mubr.bf16.mxu1 %v1507_v0 }
  0x83   : > { %457 = vmatmul.mubr.bf16.gmra.mxu0 %v1247_v23  ;;  %497 = vmatmul.mubr.bf16.gmra.mxu1 %v1248_v24 }
 0x12b   : > { %v428_v34 = vpop.f32.mrf.mxu0  ;;  %v468_v35 = vpop.f32.mrf.mxu1 }
 0x12c   : > { %v519_v36 = vmul.f32 %v1687_v31, %v428_v34  ;;  %v535_v37 = vmul.f32 %v1687_v31, %v468_v35 }
 0x12d   : > { %v430_v39 = vpop.f32.mrf.mxu0  ;;  %v470_v40 = vpop.f32.mrf.mxu1 }
 0x12e   : > { %v1698_v41 = vadd.f32 %v1689_v32, %v519_v36  ;;  %v1701_v42 = vadd.f32 %v1689_v32, %v535_v37  ;;  %v520_v43 = vmul.f32 %v1691_v33, %v430_v39  ;;  %v536_v44 = vmul.f32 %v1691_v33, %v470_v40 }
 0x12f   : > { %v432_v45 = vpop.f32.mrf.mxu0  ;;  %v472_v46 = vpop.f32.mrf.mxu1 }
 0x130   : > { %v1064_v47 = vmul.f32 -1.442695, %v1698_v41  ;;  %v1080_v48 = vmul.f32 -1.442695, %v1701_v42  ;;  %v1708_v49 = vadd.f32 %v1695_v38, %v520_v43  ;;  %v1711_v50 = vadd.f32 %v1695_v38, %v536_v44 }
 0x131   : > { %v521_v51 = vmul.f32 %v1687_v31, %v432_v45  ;;  %v537_v52 = vmul.f32 %v1687_v31, %v472_v46  ;;  %v434_v53 = vpop.f32.mrf.mxu0  ;;  %v474_v54 = vpop.f32.mrf.mxu1 }
 0x132   : > { %1249 = vpow2.f32 %v1064_v47  ;;  %v1065_v55 = vmul.f32 -1.442695, %v1708_v49  ;;  %v1081_v56 = vmul.f32 -1.442695, %v1711_v50  ;;  %v522_v57 = vmul.f32 %v1691_v33, %v434_v53 }
 0x133   : > { %1251 = vpow2.f32 %v1080_v48  ;;  %v1719_v58 = vadd.f32 %v1689_v32, %v521_v51  ;;  %v1722_v59 = vadd.f32 %v1689_v32, %v537_v52  ;;  %v538_v60 = vmul.f32 %v1691_v33, %v474_v54  ;;  %v438_v61 = vpop.f32.mrf.mxu0  ;;  %v478_v62 = vpop.f32.mrf.mxu1 }
 0x134   : > { %1253 = vpow2.f32 %v1065_v55  ;;  %v1726_v63 = vadd.f32 %v1695_v38, %v522_v57  ;;  %v523_v0 = vmul.f32 %v1687_v31, %v438_v61  ;;  %v539_v1 = vmul.f32 %v1687_v31, %v478_v62 }
 0x135   : > { %1255 = vpow2.f32 %v1081_v56  ;;  %v1066_v2 = vmul.f32 -1.442695, %v1719_v58  ;;  %v1082_v3 = vmul.f32 -1.442695, %v1722_v59  ;;  %v1733_v4 = vadd.f32 %v1695_v38, %v538_v60  ;;  %v440_v5 = vpop.f32.mrf.mxu0  ;;  %v480_v6 = vpop.f32.mrf.mxu1 }
 0x136   : > { %v1067_v7 = vmul.f32 -1.442695, %v1726_v63  ;;  %v1737_v8 = vadd.f32 %v1689_v32, %v523_v0  ;;  %v1740_v9 = vadd.f32 %v1689_v32, %v539_v1  ;;  %v524_v10 = vmul.f32 %v1691_v33, %v440_v5 }
 0x137   : > { %1257 = vpow2.f32 %v1066_v2  ;;  %v1083_v11 = vmul.f32 -1.442695, %v1733_v4  ;;  %v540_v12 = vmul.f32 %v1691_v33, %v480_v6  ;;  %v442_v13 = vpop.f32.mrf.mxu0  ;;  %v482_v14 = vpop.f32.mrf.mxu1 }
 0x138   : > { %1259 = vpow2.f32 %v1082_v3  ;;  %v1068_v15 = vmul.f32 -1.442695, %v1737_v8  ;;  %v1084_v16 = vmul.f32 -1.442695, %v1740_v9  ;;  %v1748_v17 = vadd.f32 %v1695_v38, %v524_v10 }
 0x139   : > { %1261 = vpow2.f32 %v1067_v7  ;;  %v1751_v18 = vadd.f32 %v1695_v38, %v540_v12  ;;  %v525_v19 = vmul.f32 %v1687_v31, %v442_v13  ;;  %v541_v20 = vmul.f32 %v1687_v31, %v482_v14  ;;  %v444_v21 = vpop.f32.mrf.mxu0  ;;  %v484_v22 = vpop.f32.mrf.mxu1 }
 0x13a   : > { %1263 = vpow2.f32 %v1083_v11  ;;  %v1069_v23 = vmul.f32 -1.442695, %v1748_v17  ;;  %v526_v24 = vmul.f32 %v1691_v33, %v444_v21  ;;  %v542_v25 = vmul.f32 %v1691_v33, %v484_v22 }
 0x13b   : > { %1265 = vpow2.f32 %v1068_v15  ;;  %v1085_v26 = vmul.f32 -1.442695, %v1751_v18  ;;  %v1760_v27 = vadd.f32 %v1689_v32, %v525_v19  ;;  %v1763_v28 = vadd.f32 %v1689_v32, %v541_v20  ;;  %v448_v29 = vpop.f32.mrf.mxu0  ;;  %v488_v30 = vpop.f32.mrf.mxu1 }
 0x13c   : > { %1267 = vpow2.f32 %v1084_v16  ;;  %v1766_v34 = vadd.f32 %v1695_v38, %v526_v24  ;;  %v1772_v43 = vadd.f32 %v1695_v38, %v542_v25  ;;  %v527_v52 = vmul.f32 %v1687_v31, %v448_v29 }
 0x13d   : > { %1269 = vpow2.f32 %v1069_v23  ;;  %v1070_v35 = vmul.f32 -1.442695, %v1760_v27  ;;  %v1086_v36 = vmul.f32 -1.442695, %v1763_v28  ;;  %v450_v37 = vpop.f32.mrf.mxu0  ;;  %v490_v39 = vpop.f32.mrf.mxu1  ;;  %v543_v62 = vmul.f32 %v1687_v31, %v488_v30 }
 0x13e   : > { %1271 = vpow2.f32 %v1085_v26  ;;  %v1071_v40 = vmul.f32 -1.442695, %v1766_v34  ;;  %v1087_v56 = vmul.f32 -1.442695, %v1772_v43  ;;  %v1778_v2 = vadd.f32 %v1689_v32, %v527_v52 }
 0x13f   : > { %v1250_v44 = vpop.eup %1249  ;;  %1273 = vpow2.f32 %v1070_v35  ;;  %v452_v45 = vpop.f32.mrf.mxu0  ;;  %v528_v7 = vmul.f32 %v1691_v33, %v450_v37  ;;  %v544_v10 = vmul.f32 %v1691_v33, %v490_v39  ;;  %v1785_v20 = vadd.f32 %v1689_v32, %v543_v62 }
 0x140   : > { %v1252_v46 = vpop.eup %1251  ;;  %v691_v47 = vadd.f32 1.0, %v1250_v44  ;;  %1275 = vpow2.f32 %v1086_v36  ;;  %v492_v53 = vpop.f32.mrf.mxu1  ;;  %v529_v14 = vmul.f32 %v1687_v31, %v452_v45  ;;  %v1072_v24 = vmul.f32 -1.442695, %v1778_v2 }
 0x141   : > { %v1254_v48 = vpop.eup %1253  ;;  %v707_v51 = vadd.f32 1.0, %v1252_v46  ;;  %1277 = vpow2.f32 %v1071_v40  ;;  %v454_v57 = vpop.f32.mrf.mxu0  ;;  %v545_v15 = vmul.f32 %v1687_v31, %v492_v53  ;;  %v1791_v35 = vadd.f32 %v1695_v38, %v528_v7 }
 0x142   : > { %v1256_v54 = vpop.eup %1255  ;;  %1279 = vrcp.f32 %v691_v47  ;;  %v692_v55 = vadd.f32 1.0, %v1254_v48  ;;  %v494_v3 = vpop.f32.mrf.mxu1  ;;  %v530_v21 = vmul.f32 %v1691_v33, %v454_v57  ;;  %v1794_v36 = vadd.f32 %v1695_v38, %v544_v10 }
 0x143   : > { %1281 = vrcp.f32 %v707_v51  ;;  %v708_v60 = vadd.f32 1.0, %v1256_v54  ;;  %v458_v11 = vpop.f32.mrf.mxu0  ;;  %v546_v25 = vmul.f32 %v1691_v33, %v494_v3  ;;  %v1797_v44 = vadd.f32 %v1689_v32, %v529_v14 }
 0x144   : > { %v1258_v61 = vpop.eup %1257  ;;  %1283 = vrcp.f32 %v692_v55  ;;  %v498_v26 = vpop.f32.mrf.mxu1  ;;  %v1800_v45 = vadd.f32 %v1689_v32, %v545_v15  ;;  %v1803_v48 = vadd.f32 %v1695_v38, %v530_v21  ;;  %v531_v51 = vmul.f32 %v1687_v31, %v458_v11 }
 0x145   : > { %v1260_v0 = vpop.eup %1259  ;;  %1285 = vrcp.f32 %v708_v60  ;;  %v693_v1 = vadd.f32 1.0, %v1258_v61  ;;  %v460_v37 = vpop.f32.mrf.mxu0  ;;  %v1807_v54 = vadd.f32 %v1695_v38, %v546_v25  ;;  %v547_v55 = vmul.f32 %v1687_v31, %v498_v26 }
 0x146   : > { %v1262_v5 = vpop.eup %1261  ;;  %v709_v6 = vadd.f32 1.0, %v1260_v0  ;;  %1287 = vpow2.f32 %v1087_v56  ;;  %v500_v56 = vpop.f32.mrf.mxu1  ;;  %v1088_v61 = vmul.f32 -1.442695, %v1785_v20  ;;  %v1073_v62 = vmul.f32 -1.442695, %v1791_v35 }
 0x147   : > { %v1264_v12 = vpop.eup %1263  ;;  %1289 = vrcp.f32 %v693_v1  ;;  %v694_v13 = vadd.f32 1.0, %v1262_v5  ;;  %v462_v0 = vpop.f32.mrf.mxu0  ;;  %v1089_v5 = vmul.f32 -1.442695, %v1794_v36  ;;  %v1090_v10 = vmul.f32 -1.442695, %v1800_v45 }
 0x148   : > { %v1266_v16 = vpop.eup %1265  ;;  %1291 = vrcp.f32 %v709_v6  ;;  %v710_v19 = vadd.f32 1.0, %v1264_v12  ;;  %v1074_v6 = vmul.f32 -1.442695, %v1797_v44  ;;  %v1075_v11 = vmul.f32 -1.442695, %v1803_v48 }
 0x149   : > { %v1268_v22 = vpop.eup %1267  ;;  %1293 = vrcp.f32 %v694_v13  ;;  %v695_v23 = vadd.f32 1.0, %v1266_v16  ;;  %v1818_v12 = vadd.f32 %v1689_v32, %v531_v51  ;;  %v1091_v14 = vmul.f32 -1.442695, %v1807_v54  ;;  %v464_v26 = vpop.f32.mrf.mxu0 }
 0x14a   : > { %v1270_v29 = vpop.eup %1269  ;;  %1295 = vrcp.f32 %v710_v19  ;;  %v711_v30 = vadd.f32 1.0, %v1268_v22  ;;  %v1822_v15 = vadd.f32 %v1689_v32, %v547_v55  ;;  %v532_v16 = vmul.f32 %v1691_v33, %v460_v37  ;;  %v502_v19 = vpop.f32.mrf.mxu1 }
 0x14b   : > { %v1272_v39 = vpop.eup %1271  ;;  %1297 = vrcp.f32 %v695_v23  ;;  %v696_v40 = vadd.f32 1.0, %v1270_v29  ;;  %v548_v25 = vmul.f32 %v1691_v33, %v500_v56 }
 0x14c   : > { %v1274_v46 = vpop.eup %1273  ;;  %1299 = vrcp.f32 %v711_v30  ;;  %v712_v47 = vadd.f32 1.0, %v1272_v39  ;;  %v1833_v51 = vadd.f32 %v1695_v38, %v532_v16 }
 0x14d   : > { %v1276_v52 = vpop.eup %1275  ;;  %1301 = vrcp.f32 %v696_v40  ;;  %v697_v53 = vadd.f32 1.0, %v1274_v46  ;;  %v533_v40 = vmul.f32 %v1687_v31, %v462_v0 }
 0x14e   : > { %v1278_v57 = vpop.eup %1277  ;;  %1303 = vrcp.f32 %v712_v47  ;;  %v713_v60 = vadd.f32 1.0, %v1276_v52  ;;  %v534_v52 = vmul.f32 %v1691_v33, %v464_v26 }
 0x14f   : > { %v1280_v1 = vpop.eup %1279  ;;  %1305 = vrcp.f32 %v697_v53  ;;  %v698_v3 = vadd.f32 1.0, %v1278_v57  ;;  %v1844_v53 = vadd.f32 %v1695_v38, %v548_v25 }
 0x150   : > { %v1282_v7 = vpop.eup %1281  ;;  %1307 = vrcp.f32 %v713_v60  ;;  %v787_v22 = vmul.f32 %v1280_v1, %v1698_v41  ;;  %v549_v41 = vmul.f32 %v1687_v31, %v502_v19  ;;  %v1092_v31 = vmul.f32 -1.442695, %v1822_v15 }
 0x151   : > { %v1284_v13 = vpop.eup %1283  ;;  %1309 = vrcp.f32 %v698_v3  ;;  %v803_v30 = vmul.f32 %v1282_v7, %v1701_v42  ;;  %v1850_v60 = vadd.f32 %v1689_v32, %v533_v40 }
 0x152   : > { %v1286_v21 = vpop.eup %1285  ;;  %v788_v23 = vmul.f32 %v1284_v13, %v1708_v49  ;;  %1311 = vpow2.f32 %v1072_v24  ;;  %v1855_v3 = vadd.f32 %v1689_v32, %v549_v41 }
 0x153   : > { %v1288_v29 = vpop.eup %1287  ;;  %v804_v39 = vmul.f32 %v1286_v21, %v1711_v50  ;;  %1313 = vpow2.f32 %v1088_v61  ;;  %v1076_v50 = vmul.f32 -1.442695, %v1818_v12  ;;  %v504_v61 = vpop.f32.mrf.mxu1 }
 0x154   : > { %v1290_v37 = vpop.eup %1289  ;;  %v1119_v46 = vpack.c.bf16 %v788_v23, %v787_v22  ;;  %v714_v47 = vadd.f32 1.0, %v1288_v29  ;;  %1315 = vpow2.f32 %v1073_v62 }
 0x155   : > { %v1292_v49 = vpop.eup %1291  ;;  %v1127_v24 = vpack.c.bf16 %v804_v39, %v803_v30  ;;  %1317 = vpow2.f32 %v1089_v5  ;;  %v789_v56 = vmul.f32 %v1290_v37, %v1719_v58  ;;  %v1077_v58 = vmul.f32 -1.442695, %v1833_v51 }
 0x156   : > { %v1294_v42 = vpop.eup %1293  ;;  %915 = vst [vmem:[%s1838_s29] sm:$0xff] %v1119_v46  ;;  %1319 = vrcp.f32 %v714_v47  ;;  %v805_v0 = vmul.f32 %v1292_v49, %v1722_v59  ;;  %v1093_v59 = vmul.f32 -1.442695, %v1844_v53 }
 0x157   : > { %v1296_v55 = vpop.eup %1295  ;;  %923 = vst [vmem:[%s1838_s29 + $0x40] sm:$0xff] %v1127_v24  ;;  %v790_v57 = vmul.f32 %v1294_v42, %v1726_v63  ;;  %1321 = vpow2.f32 %v1074_v6  ;;  %v1859_v63 = vadd.f32 %v1695_v38, %v534_v52 }
 0x158   : > { %v1298_v62 = vpop.eup %1297  ;;  %v806_v1 = vmul.f32 %v1296_v55, %v1733_v4  ;;  %1323 = vpow2.f32 %v1090_v10  ;;  %v550_v4 = vmul.f32 %v1691_v33, %v504_v61  ;;  %v1094_v33 = vmul.f32 -1.442695, %v1855_v3 }
 0x159   : > { %v1300_v5 = vpop.eup %1299  ;;  %v1120_v7 = vpack.c.bf16 %v790_v57, %v789_v56  ;;  %1325 = vpow2.f32 %v1075_v11  ;;  %v791_v32 = vmul.f32 %v1298_v62, %v1737_v8  ;;  %v1078_v11 = vmul.f32 -1.442695, %v1850_v60 }
 0x15a   : > { %v1302_v6 = vpop.eup %1301  ;;  %v1128_v13 = vpack.c.bf16 %v806_v1, %v805_v0  ;;  %1327 = vpow2.f32 %v1091_v14  ;;  %v807_v21 = vmul.f32 %v1300_v5, %v1740_v9  ;;  %v1079_v8 = vmul.f32 -1.442695, %v1859_v63 }
 0x15b   : > { %v1304_v10 = vpop.eup %1303  ;;  %916 = vst [vmem:[%s1838_s29 + $0x8] sm:$0xff] %v1120_v7  ;;  %v792_v16 = vmul.f32 %v1302_v6, %v1748_v17  ;;  %1329 = vpow2.f32 %v1076_v50  ;;  %v1873_v26 = vadd.f32 %v1695_v38, %v550_v4 }
 0x15c   : > { %v1306_v19 = vpop.eup %1305  ;;  %924 = vst [vmem:[%s1838_s29 + $0x48] sm:$0xff] %v1128_v13  ;;  %v808_v14 = vmul.f32 %v1304_v10, %v1751_v18  ;;  %1331 = vpow2.f32 %v1092_v31 }
 0x15d   : > { %v1308_v22 = vpop.eup %1307  ;;  %v1121_v23 = vpack.c.bf16 %v792_v16, %v791_v32  ;;  %1333 = vpow2.f32 %v1077_v58  ;;  %v793_v9 = vmul.f32 %v1306_v19, %v1760_v27  ;;  %v1095_v41 = vmul.f32 -1.442695, %v1873_v26 }
 0x15e   : > { %v1310_v17 = vpop.eup %1309  ;;  %v1129_v25 = vpack.c.bf16 %v808_v14, %v807_v21  ;;  %1335 = vpow2.f32 %v1093_v59  ;;  %v809_v24 = vmul.f32 %v1308_v22, %v1763_v28 }
 0x15f   : > { %v1312_v29 = vpop.eup %1311  ;;  %917 = vst [vmem:[%s1838_s29 + $0x10] sm:$0xff] %v1121_v23  ;;  %v794_v18 = vmul.f32 %v1310_v17, %v1766_v34  ;;  %1337 = vpow2.f32 %v1078_v11 }
 0x160   : > { %v1314_v30 = vpop.eup %1313  ;;  %925 = vst [vmem:[%s1838_s29 + $0x50] sm:$0xff] %v1129_v25  ;;  %v699_v39 = vadd.f32 1.0, %v1312_v29  ;;  %1339 = vpow2.f32 %v1094_v33 }
 0x161   : > { %v1316_v40 = vpop.eup %1315  ;;  %v1122_v37 = vpack.c.bf16 %v794_v18, %v793_v9  ;;  %v715_v46 = vadd.f32 1.0, %v1314_v30  ;;  %1341 = vpow2.f32 %v1079_v8 }
 0x162   : > { %v1318_v47 = vpop.eup %1317  ;;  %1343 = vrcp.f32 %v699_v39  ;;  %v700_v38 = vadd.f32 1.0, %v1316_v40 }
 0x163   : > { %v1320_v49 = vpop.eup %1319  ;;  %918 = vst [vmem:[%s1838_s29 + $0x18] sm:$0xff] %v1122_v37  ;;  %1345 = vrcp.f32 %v715_v46  ;;  %v716_v27 = vadd.f32 1.0, %v1318_v47 }
 0x164   : > { %v1322_v34 = vpop.eup %1321  ;;  %v810_v52 = vmul.f32 %v1320_v49, %v1772_v43  ;;  %1347 = vrcp.f32 %v700_v38 }
 0x165   : > { %v1324_v42 = vpop.eup %1323  ;;  %1349 = vrcp.f32 %v716_v27  ;;  %v701_v50 = vadd.f32 1.0, %v1322_v34 }
 0x166   : > { %v1326_v31 = vpop.eup %1325  ;;  %v1130_v55 = vpack.c.bf16 %v810_v52, %v809_v24  ;;  %v717_v56 = vadd.f32 1.0, %v1324_v42  ;;  %1351 = vpow2.f32 %v1095_v41 }
 0x167   : > { %v1328_v57 = vpop.eup %1327  ;;  %1353 = vrcp.f32 %v701_v50  ;;  %v702_v61 = vadd.f32 1.0, %v1326_v31 }
 0x168   : > { %v1330_v62 = vpop.eup %1329  ;;  %926 = vst [vmem:[%s1838_s29 + $0x58] sm:$0xff] %v1130_v55  ;;  %1355 = vrcp.f32 %v717_v56  ;;  %v718_v0 = vadd.f32 1.0, %v1328_v57 }
 0x169   : > { %v1332_v1 = vpop.eup %1331  ;;  %1357 = vrcp.f32 %v702_v61  ;;  %v703_v28 = vadd.f32 1.0, %v1330_v62 }
 0x16a   : > { %v1334_v5 = vpop.eup %1333  ;;  %1359 = vrcp.f32 %v718_v0  ;;  %v719_v43 = vadd.f32 1.0, %v1332_v1 }
 0x16b   : > { %v1336_v7 = vpop.eup %1335  ;;  %1361 = vrcp.f32 %v703_v28  ;;  %v704_v58 = vadd.f32 1.0, %v1334_v5 }
 0x16c   : > { %v1338_v6 = vpop.eup %1337  ;;  %1363 = vrcp.f32 %v719_v43  ;;  %v720_v13 = vadd.f32 1.0, %v1336_v7 }
 0x16d   : > { %v1340_v59 = vpop.eup %1339  ;;  %1365 = vrcp.f32 %v704_v58  ;;  %v705_v4 = vadd.f32 1.0, %v1338_v6 }
 0x16e   : > { %v1342_v10 = vpop.eup %1341  ;;  %1367 = vrcp.f32 %v720_v13  ;;  %v721_v19 = vadd.f32 1.0, %v1340_v59 }
 0x16f   : > { %v1344_v32 = vpop.eup %1343  ;;  %1369 = vrcp.f32 %v705_v4  ;;  %v706_v16 = vadd.f32 1.0, %v1342_v10 }
 0x170   : > { %v1346_v11 = vpop.eup %1345  ;;  %v795_v33 = vmul.f32 %v1344_v32, %v1778_v2 }
 0x171   : > { %v1348_v21 = vpop.eup %1347  ;;  %1371 = vrcp.f32 %v706_v16  ;;  %v811_v8 = vmul.f32 %v1346_v11, %v1785_v20 }
 0x172   : > { %v1350_v14 = vpop.eup %1349  ;;  %v796_v22 = vmul.f32 %v1348_v21, %v1791_v35  ;;  %1373 = vrcp.f32 %v721_v19 }
 0x173   : > { %v1352_v23 = vpop.eup %1351  ;;  %v812_v17 = vmul.f32 %v1350_v14, %v1794_v36 }
 0x174   : > { %v1354_v25 = vpop.eup %1353  ;;  %v1123_v29 = vpack.c.bf16 %v796_v22, %v795_v33  ;;  %v722_v9 = vadd.f32 1.0, %v1352_v23 }
 0x175   : > { %v1356_v18 = vpop.eup %1355  ;;  %v1131_v30 = vpack.c.bf16 %v812_v17, %v811_v8  ;;  %v797_v2 = vmul.f32 %v1354_v25, %v1797_v44 }
 0x176   : > { %v1358_v39 = vpop.eup %1357  ;;  %919 = vst [vmem:[%s1838_s29 + $0x20] sm:$0xff] %v1123_v29  ;;  %1375 = vrcp.f32 %v722_v9  ;;  %v813_v36 = vmul.f32 %v1356_v18, %v1800_v45 }
 0x177   : > { %v1360_v40 = vpop.eup %1359  ;;  %927 = vst [vmem:[%s1838_s29 + $0x60] sm:$0xff] %v1131_v30  ;;  %v798_v35 = vmul.f32 %v1358_v39, %v1803_v48 }
 0x178   : > { %v1362_v20 = vpop.eup %1361  ;;  %v814_v37 = vmul.f32 %v1360_v40, %v1807_v54 }
 0x179   : > { %v1364_v46 = vpop.eup %1363  ;;  %v1124_v47 = vpack.c.bf16 %v798_v35, %v797_v2  ;;  %v799_v27 = vmul.f32 %v1362_v20, %v1818_v12 }
 0x17a   : > { %v1366_v38 = vpop.eup %1365  ;;  %v1132_v41 = vpack.c.bf16 %v814_v37, %v813_v36  ;;  %v815_v45 = vmul.f32 %v1364_v46, %v1822_v15 }
 0x17b   : > { %v1368_v49 = vpop.eup %1367  ;;  %920 = vst [vmem:[%s1838_s29 + $0x28] sm:$0xff] %v1124_v47  ;;  %v800_v44 = vmul.f32 %v1366_v38, %v1833_v51 }
 0x17c   : > { %v1370_v48 = vpop.eup %1369  ;;  %928 = vst [vmem:[%s1838_s29 + $0x68] sm:$0xff] %v1132_v41  ;;  %v816_v54 = vmul.f32 %v1368_v49, %v1844_v53 }
 0x17d   : > { %v1125_v34 = vpack.c.bf16 %v800_v44, %v799_v27  ;;  %v801_v42 = vmul.f32 %v1370_v48, %v1850_v60 }
 0x17e   : > { %v1372_v24 = vpop.eup %1371  ;;  %v1133_v52 = vpack.c.bf16 %v816_v54, %v815_v45 }
 0x17f   : > { %921 = vst [vmem:[%s1838_s29 + $0x30] sm:$0xff] %v1125_v34  ;;  %v802_v12 = vmul.f32 %v1372_v24, %v1859_v63  ;;  %v1374_v51 = vpop.eup %1373 }
 0x180   : > { %929 = vst [vmem:[%s1838_s29 + $0x70] sm:$0xff] %v1133_v52  ;;  %v817_v15 = vmul.f32 %v1374_v51, %v1855_v3 }
 0x181   : > { %v1126_v50 = vpack.c.bf16 %v802_v12, %v801_v42 }
 0x183   : > { %v1376_v31 = vpop.eup %1375  ;;  %922 = vst [vmem:[%s1838_s29 + $0x38] sm:$0xff] %v1126_v50 }
 0x184   : > { %v818_v53 = vmul.f32 %v1376_v31, %v1873_v26 }
 0x186   : > { %v1134_v60 = vpack.c.bf16 %v818_v53, %v817_v15 }
 0x188   : > { %930 = vst [vmem:[%s1838_s29 + $0x78] sm:$0xff] %v1134_v60 }
 0x189   : > { %1444 = shalt.err (!%p1441_p0)
}
 0x18a   : > { %s1445_s8 = scalar_lea.hbm %s1912_s20, 2048  ;;  %s1449_s24 = scalar_lea.hbm %s1961_s4, 8192 }
 0x18b   : > { %p1446_p5 = scmp.ne.s32.totalorder %s1912_s20, %s1445_s8  ;;  %p1450_p4 = scmp.lt.s32.totalorder %s1912_s20, %s1961_s4 }
 0x18c   : > { %p1451_p6 = scmp.lt.s32.totalorder %s1449_s24, %s1445_s8 }
 0x18d   : > { %p1447_p9 = pnand %p1446_p5, %p1977_p10 }
 0x18e   : > { %p1452_p8 = por %p1451_p6, %p1450_p4 }
 0x18f   : > { %p1448_p1 = pneg %p1447_p9 }
 0x191   : > { %p1453_p3 = pnand %p1452_p8, %p1448_p1 }
 0x193   : > { %1456 = shalt.err (!%p1453_p3)
}
 0x194   : > { %s1509_s29 = smov 128   ;;  %s1510_s12 = smov 8  }
 0x195   : > { %1159 = dma.vmem_to_hbm [thread:$0]  (%p1977_p10), %s1914_s11, 2048, %s1912_s20, %s932_s19, %s1509_s29, %s1509_s29, %s1510_s12  }
 0x196 PF: > { %p1176_p7 = scmp.ge.s32.totalorder %s1499_s18, 2  ;;  %s961_s13 = sand.u32 1, %s1487_s15  }
 0x197   : > { %p1978_p11 = scmp.ne.s32.totalorder %s1967_s22, 0  ;;  %s962_s14 = scalar_lea.sflag [#allocation4], %s961_s13 }
 0x199   : > { %p1170_p12 = pnand %p1176_p7, %p1978_p11 }
 0x19b   : > { %p1171_p2 = pneg %p1170_p12 }
 0x19d   : > { %1482 = dma.done.wait (%p1171_p2), %s962_s14, 2048  }
 0x19e   : > { %1484 = vsyncadd (%p1171_p2), %s962_s14, 4294965248  ;;  %p18_p13 = scmp.ge.s32.totalorder %s1589_s27, 6   ;;  %s1979_s15 = smov %s1491_s16 }
 0x19f   : > { %s1980_s16 = smov %s1495_s17  ;;  %s1981_s17 = smov %s1606_s9 }
 0x1a0   : > { %s1982_s18 = smov %s1589_s27  ;;  %20 = sbr.rel (!%p18_p13) target bundleno = 6 (0x6), region = 85 }
 0x1a5   :  { %967 = vsyncpa [#allocation3], 1 }
 0x1a6   :  { %969 = vsyncpa [#allocation3 + $0x1], 1 }
 0x1a7   :  { %970 = vsyncpa [#allocation6], 1 }
 0x1a8   :  { %971 = vsyncpa [#allocation4], 1 }
 0x1a9   :  { %973 = vsyncpa [#allocation4 + $0x1], 1 }

</bundles_post_ra>
